<compile_context>
chip_gen: v7x
topology: tpu7x:2x2x1
jax: 0.10.0
libtpu: 0.0.40
codegen_flags: <defaults>
</compile_context>

<pallas_src>
import functools

import jax
import jax.numpy as jnp
from jax import lax
from jax.experimental import pallas as pl
from jax.experimental.pallas import tpu as pltpu

LANE = 128
_MASK_ARG = -1e30  # tanh(_MASK_ARG - anything finite) == -1: cancels across edges.


def _round_up(v, m):
    return -(-v // m) * m


def _cdiv(a, b):
    return -(-a // b)


def _default_n_split():
    """Split the reduction across TensorCores: 2 on multi-TC chips (v7x), else 1."""
    try:
        info = pltpu.get_tpu_info()
    except Exception:
        return 1
    for attr in ("num_tensorcores", "tensorcores_per_chip", "num_cores",
                 "cores_per_chip"):
        v = getattr(info, attr, None)
        if isinstance(v, int) and v >= 1:
            return 2 if v >= 2 else 1
    return 1


def _soft_hist_kernel(x_ref, out_ref, *, half_kappa, khalf_edges, total, tm,
                      chunk_rows):
    """Accumulate per-edge sums  T_e = sum_n tanh(0.5*kappa*x_n - khalf_e)."""
    n_edges = len(khalf_edges)
    c = pl.program_id(0)          # TensorCore split
    i = pl.program_id(1)          # reduction step within the split
    steps = pl.num_programs(1)

    # Zero the VMEM-resident output accumulator at the start of each split's pass.
    @pl.when(i == 0)
    def _init():
        out_ref[...] = jnp.zeros_like(out_ref)

    # Intended global element offset of this tile (independent of the index
    # clamping the BlockSpec index_map applies to out-of-range blocks).
    base_elem = (c * steps + i) * (tm * LANE)

    @pl.when(base_elem < total)   # skip tiles that lie entirely past the end
    def _accumulate():
        # Per-edge (1, LANE) running partials, kept in registers across chunks.
        partials = [jnp.zeros((1, LANE), jnp.float32) for _ in range(n_edges)]

        def do_chunk(row_off, nrows, partials):
            xc = x_ref[row_off:row_off + nrows, :]              # static slice
            iota = (lax.broadcasted_iota(jnp.int32, (nrows, LANE), 0) * LANE
                    + lax.broadcasted_iota(jnp.int32, (nrows, LANE), 1))
            elem_idx = base_elem + row_off * LANE + iota
            # Mask the tail of the boundary tile (and any garbage from the
            # partially-overhanging last block): masked lanes give tanh == -1
            # for every edge -> identical constant -> cancels in the bin diff.
            xk2 = jnp.where(elem_idx < total, half_kappa * xc, _MASK_ARG)
            new = []
            for e in range(n_edges):
                t = jnp.tanh(xk2 - khalf_edges[e])               # 1 EUP push
                new.append(partials[e] + jnp.sum(t, axis=0, keepdims=True))
            return new

        n_full = tm // chunk_rows
        for ck in range(n_full):
            partials = do_chunk(ck * chunk_rows, chunk_rows, partials)
        rem = tm - n_full * chunk_rows
        if rem:
            partials = do_chunk(n_full * chunk_rows, rem, partials)

        # One dense RMW of the lane-dense accumulator per grid step.
        out_ref[...] += jnp.concatenate(partials, axis=0)[None, :, :]


def soft_histogram(x, *, bins, vmin, vmax, kappa, tm=1024, chunk_rows=64,
                   n_split=None):
    """Pallas TPU equivalent of SoftHistogram(bins, min, max, kappa)(x)."""
    bins = int(bins)
    assert bins >= 1
    delta = float(vmax - vmin) / float(bins)
    half_kappa = 0.5 * float(kappa)
    n_edges = bins + 1
    # Bin b = sigmoid(k*(x - edge_b)) - sigmoid(k*(x - edge_{b+1})) with
    # edge_e = vmin + delta*e  and  sigmoid(a) = 0.5*tanh(a/2) + 0.5.
    khalf_edges = tuple(half_kappa * (float(vmin) + delta * e)
                        for e in range(n_edges))

    xf = jnp.asarray(x, dtype=jnp.float32).reshape(-1)
    total = int(xf.size)
    assert total > 0

    # Reshape to (rows, LANE) with rows a multiple of 8.  Only a tiny tail
    # (< 8*128 elements) is ever appended; padded / out-of-range elements are
    # masked inside the kernel, so the pad value is irrelevant.
    padded_total = _round_up(total, 8 * LANE)
    if padded_total != total:
        xf = jnp.concatenate(
            [xf, jnp.zeros((padded_total - total,), dtype=jnp.float32)])
    rows = padded_total // LANE
    x2d = xf.reshape(rows, LANE)

    # Reduction split across TensorCores (v7x).  Degenerate (1) on v5e/v6e.
    if n_split is None:
        n_split = _default_n_split()
    n_split = max(1, int(n_split))
    if rows < n_split * 8:
        n_split = 1

    chunk_rows = max(8, _round_up(int(chunk_rows), 8))
    rows_per_split = _round_up(_cdiv(rows, n_split), 8)
    tm_eff = min(_round_up(int(tm), 8), rows_per_split)   # <= rows, multiple of 8
    chunk_eff = min(chunk_rows, tm_eff)
    steps = _cdiv(rows, n_split * tm_eff)
    nblocks = _cdiv(rows, tm_eff)

    def x_index_map(c, i):
        # Clamp so redundant blocks of the split axis never index past the
        # array; their compute is skipped / masked inside the kernel anyway.
        return (jnp.minimum(c * steps + i, nblocks - 1), 0)

    elems_processed = n_split * steps * tm_eff * LANE
    cost = pl.CostEstimate(
        flops=elems_processed * (2 * n_edges + 2),
        transcendentals=elems_processed * n_edges,
        bytes_accessed=4 * rows * LANE + 4 * n_split * n_edges * LANE,
    )

    kernel = functools.partial(
        _soft_hist_kernel, half_kappa=half_kappa, khalf_edges=khalf_edges,
        total=total, tm=tm_eff, chunk_rows=chunk_eff)

    edge_acc = pl.pallas_call(
        kernel,
        out_shape=jax.ShapeDtypeStruct((n_split, n_edges, LANE), jnp.float32),
        grid_spec=pltpu.PrefetchScalarGridSpec(
            num_scalar_prefetch=0,
            grid=(n_split, steps),
            in_specs=[pl.BlockSpec((tm_eff, LANE), x_index_map)],
            out_specs=pl.BlockSpec((1, n_edges, LANE), lambda c, i: (c, 0, 0)),
        ),
        compiler_params=pltpu.CompilerParams(
            # On v7x, verify in the profile that the split axis lands on both
            # TensorCores; if one core does all steps, switch the first entry
            # to pltpu.CORE_PARALLEL.
            dimension_semantics=("parallel", "arbitrary"),
        ),
        cost_estimate=cost,
    )(x2d)

    # Finalize in the wrapper: combine splits + lanes, then adjacent-edge
    # differences.  bin_b = 0.5*(T_b - T_{b+1}) (the sigmoid "+0.5" cancels,
    # and so does the -1 contributed to every edge by masked elements).
    edge_sums = jnp.sum(edge_acc, axis=(0, 2))            # (bins+1,)
    return 0.5 * (edge_sums[:bins] - edge_sums[1:])


def _reference(x, *, bins, vmin, vmax, kappa):
    """Plain-JAX transcription of the PyTorch forward (for verification)."""
    delta = float(vmax - vmin) / float(bins)
    centers = float(vmin) + delta * (jnp.arange(bins, dtype=jnp.float32) + 0.5)
    s = jnp.zeros((bins,), dtype=jnp.float32)
    for i in range(x.shape[0]):
        z = x[i][None, :] - centers[:, None]               # (bins, N)
        z = jax.nn.sigmoid(kappa * (z + delta / 2.0)) \
            - jax.nn.sigmoid(kappa * (z - delta / 2.0))
        s = s + z.sum(axis=1)
    return s


if __name__ == "__main__":
    # SoftHistogram(bins=16, min=0.0, max=1.0, kappa=25.0)
    bins, vmin, vmax, kappa = 16, 0.0, 1.0, 25.0

    key = jax.random.PRNGKey(0)
    # x: (B, N) — each row is one 1-D sample vector, as the PyTorch loop implies.
    x = jax.random.uniform(key, (2, 2048), dtype=jnp.float32,
                           minval=vmin, maxval=vmax)

    out = soft_histogram(x, bins=bins, vmin=vmin, vmax=vmax, kappa=kappa)
    out = jax.block_until_ready(out)

    ref = _reference(x, bins=bins, vmin=vmin, vmax=vmax, kappa=kappa)
    assert out.shape == (bins,)
    # Edge-sum formulation computes each bin as a difference of two O(total)
    # sums, so allow a slightly looser (still ~1e-5 relative) tolerance.
    assert jnp.allclose(out, ref, rtol=1e-4, atol=5e-3), (out, ref)

    print("KERNEL_OK")
</pallas_src>

<mosaic_0001>
module attributes {stable_mosaic.version = 11 : i64} {
  func.func @_soft_hist_kernel(%arg0: i32, %arg1: i32, %arg2: memref<32x128xf32, #tpu.memory_space<vmem>>, %arg3: memref<1x17x128xf32, #tpu.memory_space<vmem>>) attributes {dimension_semantics = [#tpu.dimension_semantics<parallel>, #tpu.dimension_semantics<arbitrary>], iteration_bounds = array<i64: 1, 1>, scalar_prefetch = 0 : i64, scratch_operands = 0 : i64, tpu.core_type = #tpu.core_type<tc>, window_params = [{transform_indices = @transform_0, window_bounds = array<i64: 32, 128>}, {transform_indices = @transform_1, window_bounds = array<i64: 1, 17, 128>}]} {
    %c0_i32 = arith.constant 0 : i32
    %0 = arith.cmpi eq, %arg1, %c0_i32 : i32
    %1 = arith.extui %0 : i1 to i32
    %c0_i32_0 = arith.constant 0 : i32
    %2 = arith.cmpi ne, %1, %c0_i32_0 : i32
    scf.if %2 {
      %cst = arith.constant 0.000000e+00 : f32
      %9 = vector.broadcast %cst : f32 to vector<1x17x128xf32>
      %c0 = arith.constant 0 : index
      %c0_3 = arith.constant 0 : index
      %c0_4 = arith.constant 0 : index
      %10 = vector.load %arg3[%c0, %c0_3, %c0_4] : memref<1x17x128xf32, #tpu.memory_space<vmem>>, vector<1x17x128xf32>
      tpu.vector_store %arg3[%c0, %c0_3, %c0_4], %9 {strides = array<i32>} : memref<1x17x128xf32, #tpu.memory_space<vmem>>, vector<1x17x128xf32>,
    } else {
    }
    %c1_i32 = arith.constant 1 : i32
    %3 = arith.muli %arg0, %c1_i32 : i32
    %4 = arith.addi %3, %arg1 : i32
    %c4096_i32 = arith.constant 4096 : i32
    %5 = arith.muli %4, %c4096_i32 : i32
    %c4096_i32_1 = arith.constant 4096 : i32
    %6 = arith.cmpi slt, %5, %c4096_i32_1 : i32
    %7 = arith.extui %6 : i1 to i32
    %c0_i32_2 = arith.constant 0 : i32
    %8 = arith.cmpi ne, %7, %c0_i32_2 : i32
    scf.if %8 {
      %cst = arith.constant 0.000000e+00 : f32
      %9 = vector.broadcast %cst : f32 to vector<1x128xf32>
      %cst_3 = arith.constant 0.000000e+00 : f32
      %10 = vector.broadcast %cst_3 : f32 to vector<1x128xf32>
      %cst_4 = arith.constant 0.000000e+00 : f32
      %11 = vector.broadcast %cst_4 : f32 to vector<1x128xf32>
      %cst_5 = arith.constant 0.000000e+00 : f32
      %12 = vector.broadcast %cst_5 : f32 to vector<1x128xf32>
      %cst_6 = arith.constant 0.000000e+00 : f32
      %13 = vector.broadcast %cst_6 : f32 to vector<1x128xf32>
      %cst_7 = arith.constant 0.000000e+00 : f32
      %14 = vector.broadcast %cst_7 : f32 to vector<1x128xf32>
      %cst_8 = arith.constant 0.000000e+00 : f32
      %15 = vector.broadcast %cst_8 : f32 to vector<1x128xf32>
      %cst_9 = arith.constant 0.000000e+00 : f32
      %16 = vector.broadcast %cst_9 : f32 to vector<1x128xf32>
      %cst_10 = arith.constant 0.000000e+00 : f32
      %17 = vector.broadcast %cst_10 : f32 to vector<1x128xf32>
      %cst_11 = arith.constant 0.000000e+00 : f32
      %18 = vector.broadcast %cst_11 : f32 to vector<1x128xf32>
      %cst_12 = arith.constant 0.000000e+00 : f32
      %19 = vector.broadcast %cst_12 : f32 to vector<1x128xf32>
      %cst_13 = arith.constant 0.000000e+00 : f32
      %20 = vector.broadcast %cst_13 : f32 to vector<1x128xf32>
      %cst_14 = arith.constant 0.000000e+00 : f32
      %21 = vector.broadcast %cst_14 : f32 to vector<1x128xf32>
      %cst_15 = arith.constant 0.000000e+00 : f32
      %22 = vector.broadcast %cst_15 : f32 to vector<1x128xf32>
      %cst_16 = arith.constant 0.000000e+00 : f32
      %23 = vector.broadcast %cst_16 : f32 to vector<1x128xf32>
      %cst_17 = arith.constant 0.000000e+00 : f32
      %24 = vector.broadcast %cst_17 : f32 to vector<1x128xf32>
      %cst_18 = arith.constant 0.000000e+00 : f32
      %25 = vector.broadcast %cst_18 : f32 to vector<1x128xf32>
      %c0 = arith.constant 0 : index
      %c0_19 = arith.constant 0 : index
      %26 = vector.load %arg2[%c0, %c0_19] : memref<32x128xf32, #tpu.memory_space<vmem>>, vector<32x128xf32>
      %27 = tpu.iota {dimensions = array<i32: 0>} : vector<32x128xi32>
      %c128_i32 = arith.constant 128 : i32
      %28 = vector.broadcast %c128_i32 : i32 to vector<32x128xi32>
      %29 = arith.muli %27, %28 : vector<32x128xi32>
      %30 = tpu.iota {dimensions = array<i32: 1>} : vector<32x128xi32>
      %31 = arith.addi %29, %30 : vector<32x128xi32>
      %c0_i32_20 = arith.constant 0 : i32
      %32 = arith.addi %5, %c0_i32_20 : i32
      %33 = vector.broadcast %32 : i32 to vector<32x128xi32>
      %34 = arith.addi %33, %31 : vector<32x128xi32>
      %c4096_i32_21 = arith.constant 4096 : i32
      %35 = vector.broadcast %c4096_i32_21 : i32 to vector<32x128xi32>
      %36 = arith.cmpi slt, %34, %35 : vector<32x128xi32>
      %cst_22 = arith.constant 1.250000e+01 : f32
      %37 = vector.broadcast %cst_22 : f32 to vector<32x128xf32>
      %38 = arith.mulf %37, %26 : vector<32x128xf32>
      %cst_23 = arith.constant -1.000000e+30 : f32
      %39 = vector.broadcast %cst_23 : f32 to vector<32x128xf32>
      %40 = arith.select %36, %38, %39 : vector<32x128xi1>, vector<32x128xf32>
      %cst_24 = arith.constant 0.000000e+00 : f32
      %41 = vector.broadcast %cst_24 : f32 to vector<32x128xf32>
      %42 = arith.subf %40, %41 : vector<32x128xf32>
      %43 = math.tanh %42 : vector<32x128xf32>
      %cst_25 = arith.constant dense<0.000000e+00> : vector<128xf32>
      %44 = vector.multi_reduction <add>, %43, %cst_25 [0] : vector<32x128xf32> to vector<128xf32>
      %45 = vector.shape_cast %44 : vector<128xf32> to vector<1x128xf32>
      %46 = arith.addf %9, %45 : vector<1x128xf32>
      %cst_26 = arith.constant 7.812500e-01 : f32
      %47 = vector.broadcast %cst_26 : f32 to vector<32x128xf32>
      %48 = arith.subf %40, %47 : vector<32x128xf32>
      %49 = math.tanh %48 : vector<32x128xf32>
      %cst_27 = arith.constant dense<0.000000e+00> : vector<128xf32>
      %50 = vector.multi_reduction <add>, %49, %cst_27 [0] : vector<32x128xf32> to vector<128xf32>
      %51 = vector.shape_cast %50 : vector<128xf32> to vector<1x128xf32>
      %52 = arith.addf %10, %51 : vector<1x128xf32>
      %cst_28 = arith.constant 1.562500e+00 : f32
      %53 = vector.broadcast %cst_28 : f32 to vector<32x128xf32>
      %54 = arith.subf %40, %53 : vector<32x128xf32>
      %55 = math.tanh %54 : vector<32x128xf32>
      %cst_29 = arith.constant dense<0.000000e+00> : vector<128xf32>
      %56 = vector.multi_reduction <add>, %55, %cst_29 [0] : vector<32x128xf32> to vector<128xf32>
      %57 = vector.shape_cast %56 : vector<128xf32> to vector<1x128xf32>
      %58 = arith.addf %11, %57 : vector<1x128xf32>
      %cst_30 = arith.constant 2.343750e+00 : f32
      %59 = vector.broadcast %cst_30 : f32 to vector<32x128xf32>
      %60 = arith.subf %40, %59 : vector<32x128xf32>
      %61 = math.tanh %60 : vector<32x128xf32>
      %cst_31 = arith.constant dense<0.000000e+00> : vector<128xf32>
      %62 = vector.multi_reduction <add>, %61, %cst_31 [0] : vector<32x128xf32> to vector<128xf32>
      %63 = vector.shape_cast %62 : vector<128xf32> to vector<1x128xf32>
      %64 = arith.addf %12, %63 : vector<1x128xf32>
      %cst_32 = arith.constant 3.125000e+00 : f32
      %65 = vector.broadcast %cst_32 : f32 to vector<32x128xf32>
      %66 = arith.subf %40, %65 : vector<32x128xf32>
      %67 = math.tanh %66 : vector<32x128xf32>
      %cst_33 = arith.constant dense<0.000000e+00> : vector<128xf32>
      %68 = vector.multi_reduction <add>, %67, %cst_33 [0] : vector<32x128xf32> to vector<128xf32>
      %69 = vector.shape_cast %68 : vector<128xf32> to vector<1x128xf32>
      %70 = arith.addf %13, %69 : vector<1x128xf32>
      %cst_34 = arith.constant 3.906250e+00 : f32
      %71 = vector.broadcast %cst_34 : f32 to vector<32x128xf32>
      %72 = arith.subf %40, %71 : vector<32x128xf32>
      %73 = math.tanh %72 : vector<32x128xf32>
      %cst_35 = arith.constant dense<0.000000e+00> : vector<128xf32>
      %74 = vector.multi_reduction <add>, %73, %cst_35 [0] : vector<32x128xf32> to vector<128xf32>
      %75 = vector.shape_cast %74 : vector<128xf32> to vector<1x128xf32>
      %76 = arith.addf %14, %75 : vector<1x128xf32>
      %cst_36 = arith.constant 4.687500e+00 : f32
      %77 = vector.broadcast %cst_36 : f32 to vector<32x128xf32>
      %78 = arith.subf %40, %77 : vector<32x128xf32>
      %79 = math.tanh %78 : vector<32x128xf32>
      %cst_37 = arith.constant dense<0.000000e+00> : vector<128xf32>
      %80 = vector.multi_reduction <add>, %79, %cst_37 [0] : vector<32x128xf32> to vector<128xf32>
      %81 = vector.shape_cast %80 : vector<128xf32> to vector<1x128xf32>
      %82 = arith.addf %15, %81 : vector<1x128xf32>
      %cst_38 = arith.constant 5.468750e+00 : f32
      %83 = vector.broadcast %cst_38 : f32 to vector<32x128xf32>
      %84 = arith.subf %40, %83 : vector<32x128xf32>
      %85 = math.tanh %84 : vector<32x128xf32>
      %cst_39 = arith.constant dense<0.000000e+00> : vector<128xf32>
      %86 = vector.multi_reduction <add>, %85, %cst_39 [0] : vector<32x128xf32> to vector<128xf32>
      %87 = vector.shape_cast %86 : vector<128xf32> to vector<1x128xf32>
      %88 = arith.addf %16, %87 : vector<1x128xf32>
      %cst_40 = arith.constant 6.250000e+00 : f32
      %89 = vector.broadcast %cst_40 : f32 to vector<32x128xf32>
      %90 = arith.subf %40, %89 : vector<32x128xf32>
      %91 = math.tanh %90 : vector<32x128xf32>
      %cst_41 = arith.constant dense<0.000000e+00> : vector<128xf32>
      %92 = vector.multi_reduction <add>, %91, %cst_41 [0] : vector<32x128xf32> to vector<128xf32>
      %93 = vector.shape_cast %92 : vector<128xf32> to vector<1x128xf32>
      %94 = arith.addf %17, %93 : vector<1x128xf32>
      %cst_42 = arith.constant 7.031250e+00 : f32
      %95 = vector.broadcast %cst_42 : f32 to vector<32x128xf32>
      %96 = arith.subf %40, %95 : vector<32x128xf32>
      %97 = math.tanh %96 : vector<32x128xf32>
      %cst_43 = arith.constant dense<0.000000e+00> : vector<128xf32>
      %98 = vector.multi_reduction <add>, %97, %cst_43 [0] : vector<32x128xf32> to vector<128xf32>
      %99 = vector.shape_cast %98 : vector<128xf32> to vector<1x128xf32>
      %100 = arith.addf %18, %99 : vector<1x128xf32>
      %cst_44 = arith.constant 7.812500e+00 : f32
      %101 = vector.broadcast %cst_44 : f32 to vector<32x128xf32>
      %102 = arith.subf %40, %101 : vector<32x128xf32>
      %103 = math.tanh %102 : vector<32x128xf32>
      %cst_45 = arith.constant dense<0.000000e+00> : vector<128xf32>
      %104 = vector.multi_reduction <add>, %103, %cst_45 [0] : vector<32x128xf32> to vector<128xf32>
      %105 = vector.shape_cast %104 : vector<128xf32> to vector<1x128xf32>
      %106 = arith.addf %19, %105 : vector<1x128xf32>
      %cst_46 = arith.constant 8.593750e+00 : f32
      %107 = vector.broadcast %cst_46 : f32 to vector<32x128xf32>
      %108 = arith.subf %40, %107 : vector<32x128xf32>
      %109 = math.tanh %108 : vector<32x128xf32>
      %cst_47 = arith.constant dense<0.000000e+00> : vector<128xf32>
      %110 = vector.multi_reduction <add>, %109, %cst_47 [0] : vector<32x128xf32> to vector<128xf32>
      %111 = vector.shape_cast %110 : vector<128xf32> to vector<1x128xf32>
      %112 = arith.addf %20, %111 : vector<1x128xf32>
      %cst_48 = arith.constant 9.375000e+00 : f32
      %113 = vector.broadcast %cst_48 : f32 to vector<32x128xf32>
      %114 = arith.subf %40, %113 : vector<32x128xf32>
      %115 = math.tanh %114 : vector<32x128xf32>
      %cst_49 = arith.constant dense<0.000000e+00> : vector<128xf32>
      %116 = vector.multi_reduction <add>, %115, %cst_49 [0] : vector<32x128xf32> to vector<128xf32>
      %117 = vector.shape_cast %116 : vector<128xf32> to vector<1x128xf32>
      %118 = arith.addf %21, %117 : vector<1x128xf32>
      %cst_50 = arith.constant 10.15625 : f32
      %119 = vector.broadcast %cst_50 : f32 to vector<32x128xf32>
      %120 = arith.subf %40, %119 : vector<32x128xf32>
      %121 = math.tanh %120 : vector<32x128xf32>
      %cst_51 = arith.constant dense<0.000000e+00> : vector<128xf32>
      %122 = vector.multi_reduction <add>, %121, %cst_51 [0] : vector<32x128xf32> to vector<128xf32>
      %123 = vector.shape_cast %122 : vector<128xf32> to vector<1x128xf32>
      %124 = arith.addf %22, %123 : vector<1x128xf32>
      %cst_52 = arith.constant 1.093750e+01 : f32
      %125 = vector.broadcast %cst_52 : f32 to vector<32x128xf32>
      %126 = arith.subf %40, %125 : vector<32x128xf32>
      %127 = math.tanh %126 : vector<32x128xf32>
      %cst_53 = arith.constant dense<0.000000e+00> : vector<128xf32>
      %128 = vector.multi_reduction <add>, %127, %cst_53 [0] : vector<32x128xf32> to vector<128xf32>
      %129 = vector.shape_cast %128 : vector<128xf32> to vector<1x128xf32>
      %130 = arith.addf %23, %129 : vector<1x128xf32>
      %cst_54 = arith.constant 11.71875 : f32
      %131 = vector.broadcast %cst_54 : f32 to vector<32x128xf32>
      %132 = arith.subf %40, %131 : vector<32x128xf32>
      %133 = math.tanh %132 : vector<32x128xf32>
      %cst_55 = arith.constant dense<0.000000e+00> : vector<128xf32>
      %134 = vector.multi_reduction <add>, %133, %cst_55 [0] : vector<32x128xf32> to vector<128xf32>
      %135 = vector.shape_cast %134 : vector<128xf32> to vector<1x128xf32>
      %136 = arith.addf %24, %135 : vector<1x128xf32>
      %cst_56 = arith.constant 1.250000e+01 : f32
      %137 = vector.broadcast %cst_56 : f32 to vector<32x128xf32>
      %138 = arith.subf %40, %137 : vector<32x128xf32>
      %139 = math.tanh %138 : vector<32x128xf32>
      %cst_57 = arith.constant dense<0.000000e+00> : vector<128xf32>
      %140 = vector.multi_reduction <add>, %139, %cst_57 [0] : vector<32x128xf32> to vector<128xf32>
      %141 = vector.shape_cast %140 : vector<128xf32> to vector<1x128xf32>
      %142 = arith.addf %25, %141 : vector<1x128xf32>
      %c0_58 = arith.constant 0 : index
      %c0_59 = arith.constant 0 : index
      %c0_60 = arith.constant 0 : index
      %143 = vector.load %arg3[%c0_58, %c0_59, %c0_60] : memref<1x17x128xf32, #tpu.memory_space<vmem>>, vector<1x17x128xf32>
      %144 = tpu.concatenate %46, %52, %58, %64, %70, %76, %82, %88, %94, %100, %106, %112, %118, %124, %130, %136 in 0 : vector<1x128xf32>, vector<1x128xf32>, vector<1x128xf32>, vector<1x128xf32>, vector<1x128xf32>, vector<1x128xf32>, vector<1x128xf32>, vector<1x128xf32>, vector<1x128xf32>, vector<1x128xf32>, vector<1x128xf32>, vector<1x128xf32>, vector<1x128xf32>, vector<1x128xf32>, vector<1x128xf32>, vector<1x128xf32> -> vector<16x128xf32>
      %145 = tpu.concatenate %144, %142 in 0 : vector<16x128xf32>, vector<1x128xf32> -> vector<17x128xf32>
      %146 = vector.shape_cast %145 : vector<17x128xf32> to vector<1x17x128xf32>
      %147 = arith.addf %143, %146 : vector<1x17x128xf32>
      %c0_61 = arith.constant 0 : index
      %c0_62 = arith.constant 0 : index
      %c0_63 = arith.constant 0 : index
      %148 = vector.load %arg3[%c0_61, %c0_62, %c0_63] : memref<1x17x128xf32, #tpu.memory_space<vmem>>, vector<1x17x128xf32>
      tpu.vector_store %arg3[%c0_61, %c0_62, %c0_63], %147 {strides = array<i32>} : memref<1x17x128xf32, #tpu.memory_space<vmem>>, vector<1x17x128xf32>,
    } else {
    }
    return
  }
  func.func @transform_0(%arg0: i32, %arg1: i32) -> (i32, i32) {
    %c1_i32 = arith.constant 1 : i32
    %0 = arith.muli %arg0, %c1_i32 : i32
    %1 = arith.addi %0, %arg1 : i32
    %c0_i32 = arith.constant 0 : i32
    %2 = arith.minsi %1, %c0_i32 : i32
    %c0_i32_0 = arith.constant 0 : i32
    %c0_i32_1 = arith.constant 0 : i32
    return %2, %c0_i32_0 : i32, i32
  }
  func.func @transform_1(%arg0: i32, %arg1: i32) -> (i32, i32, i32) {
    %c0_i32 = arith.constant 0 : i32
    %c0_i32_0 = arith.constant 0 : i32
    %c0_i32_1 = arith.constant 0 : i32
    return %arg0, %c0_i32, %c0_i32_0 : i32, i32, i32
  }
}

</mosaic_0001>

<bundles_post_ra>
// kernel: tpu_custom_call.1
= control target key start
LH: loop header
LB: loop body
LE: loop exit
PB: predicated region body
PF: predicated region fallthrough
CT: control target
= control target key end

     0   :  { %6 = vsyncpa [#allocation3], 0  ;;  %s648_s6 = smov [#allocation2]   ;;  %s779_s0 = inlined_call_operand.hbm [shape: f32[32,128], index: 0, kind: input, shape index: {}]   ;;  %s780_s1 = inlined_call_operand.vmem [shape: f32[1,17,128], index: 1, kind: output, shape index: {}]  }
   0x1   :  { %s18_s7 = sshll.u32 %s648_s6, 4  ;;  %s624_s10 = scalar_lea.hbm %s779_s0, 512  ;;  %s19_s7 = int_to_ptr.vmem [resolvable:$true] %s18_s7 }
   0x2   :  { %p625_p0 = scmp.ne.s32.totalorder %s779_s0, %s624_s10  ;;  %p628_p1 = scmp.lt.u32.totalorder %s624_s10, %s779_s0 }
   0x4   :  { %p630_p2 = pnand %p628_p1, %p625_p0 }
   0x6   :  { %633 = shalt.err (!%p630_p2)
}
   0x7   :  { %s634_s15 = scalar_lea.vmem %s19_s7, 512  ;;  %p639_p4 = scmp.lt.s32.totalorder %s19_s7, %s19_s7 }
   0x8   :  { %p635_p3 = scmp.ne.s32.totalorder %s19_s7, %s634_s15  ;;  %p640_p5 = scmp.lt.s32.totalorder %s634_s15, %s634_s15 }
   0xa   :  { %p641_p6 = por %p640_p5, %p639_p4 }
   0xc   :  { %p642_p7 = pnand %p641_p6, %p635_p3 }
   0xe   :  { %645 = shalt.err (!%p642_p7)
}
   0xf   :  { %s649_s16 = smov 128   ;;  %s650_s17 = smov 8  }
  0x10   :  { %24 = dma.hbm_to_vmem [thread:$0]  %s779_s0, 512, %s19_s7, [#allocation3], %s649_s16, %s649_s16, %s650_s17  }
  0x11   :  { %646 = dma.done.wait [#allocation3], 512  }
  0x12   :  { %647 = vsyncadd [#allocation3], 4294966784  ;;  %v49_v0 = vlaneseq  ;;  %v651_v1 = vmov 0.0   ;;  %v45_v11 = vld [vmem:[#allocation2] sm:$0xff]  ;;  %v46_v12 = vld [vmem:[#allocation2 + $0x8] sm:$0xff]  ;;  %vm386_vm4 = vcmask 1040384  }
  0x13   :  { %38 = vst [vmem:[%s780_s1 + $0x10] sm:$0x1] %v651_v1  ;;  %v47_v13 = vld [vmem:[#allocation2 + $0x10] sm:$0xff]  ;;  %v48_v15 = vld [vmem:[#allocation2 + $0x18] sm:$0xff]  ;;  %v73_v18 = vmul.f32 12.5, %v45_v11  ;;  %v74_v20 = vmul.f32 12.5, %v46_v12 }
  0x14   :  { %v50_v2 = vshrl.u32 %v49_v0, 7  ;;  %v59_v3 = vand.u32 127, %v49_v0  ;;  %v75_v21 = vmul.f32 12.5, %v47_v13  ;;  %v76_v22 = vmul.f32 12.5, %v48_v15 }
  0x15   :  { %vm388_vm5 = vcmask 1041408   ;;  %vm390_vm6 = vcmask 1042432   ;;  %vm392_vm7 = vcmask 1043456   ;;  %vm394_vm8 = vcmask 1044480  }
  0x16   :  { %v51_v4 = vadd.s32 8, %v50_v2  ;;  %v52_v5 = vadd.s32 16, %v50_v2  ;;  %v53_v6 = vadd.s32 24, %v50_v2  ;;  %v54_v7 = vmul.u32 128, %v50_v2 }
  0x17   :  { %vm396_vm9 = vcmask 1045504   ;;  %vm398_vm10 = vcmask 1046528  }
  0x18   :  { %v55_v8 = vmul.u32 128, %v51_v4  ;;  %v56_v9 = vmul.u32 128, %v52_v5  ;;  %v60_v10 = vadd.s32 %v59_v3, %v54_v7 }
  0x19   :  { %v57_v14 = vmul.u32 128, %v53_v6 }
  0x1a   :  { %v61_v16 = vadd.s32 %v59_v3, %v55_v8  ;;  %v62_v17 = vadd.s32 %v59_v3, %v56_v9  ;;  %vm69_vm0 = vcmp.lt.s32.totalorder %v60_v10, 4096 }
  0x1b   :  { %v63_v19 = vadd.s32 %v59_v3, %v57_v14  ;;  %v677_v23 = vsel %vm69_vm0, %v73_v18, -1e+30 }
  0x1c   :  { %vm70_vm1 = vcmp.lt.s32.totalorder %v61_v16, 4096  ;;  %vm71_vm2 = vcmp.lt.s32.totalorder %v62_v17, 4096  ;;  %488 = vtanh.f32 %v677_v23  ;;  %v420_v27 = vadd.f32 -0.78125, %v677_v23 }
  0x1d   :  { %vm72_vm3 = vcmp.lt.s32.totalorder %v63_v19, 4096  ;;  %v679_v24 = vsel %vm70_vm1, %v74_v20, -1e+30  ;;  %v681_v25 = vsel %vm71_vm2, %v75_v21, -1e+30  ;;  %v424_v31 = vadd.f32 -1.5625, %v677_v23 }
  0x1e   :  { %v684_v26 = vsel %vm72_vm3, %v76_v22, -1e+30  ;;  %490 = vtanh.f32 %v679_v24  ;;  %v421_v28 = vadd.f32 -0.78125, %v679_v24  ;;  %v422_v29 = vadd.f32 -0.78125, %v681_v25 }
  0x1f   :  { %492 = vtanh.f32 %v681_v25  ;;  %v423_v30 = vadd.f32 -0.78125, %v684_v26  ;;  %v425_v32 = vadd.f32 -1.5625, %v679_v24  ;;  %v426_v33 = vadd.f32 -1.5625, %v681_v25 }
  0x20   :  { %494 = vtanh.f32 %v684_v26  ;;  %v427_v34 = vadd.f32 -1.5625, %v684_v26  ;;  %v428_v35 = vadd.f32 -2.34375, %v677_v23  ;;  %v429_v36 = vadd.f32 -2.34375, %v679_v24 }
  0x21   :  { %496 = vtanh.f32 %v420_v27  ;;  %v430_v38 = vadd.f32 -2.34375, %v681_v25  ;;  %v431_v40 = vadd.f32 -2.34375, %v684_v26  ;;  %v432_v43 = vadd.f32 -3.125, %v677_v23 }
  0x22   :  { %498 = vtanh.f32 %v421_v28  ;;  %v433_v45 = vadd.f32 -3.125, %v679_v24  ;;  %v434_v48 = vadd.f32 -3.125, %v681_v25  ;;  %v435_v50 = vadd.f32 -3.125, %v684_v26 }
  0x23   :  { %500 = vtanh.f32 %v422_v29  ;;  %v436_v54 = vadd.f32 -3.90625, %v677_v23  ;;  %v437_v56 = vadd.f32 -3.90625, %v679_v24  ;;  %v438_v60 = vadd.f32 -3.90625, %v681_v25 }
  0x24   :  { %502 = vtanh.f32 %v423_v30  ;;  %v439_v62 = vadd.f32 -3.90625, %v684_v26  ;;  %v440_v3 = vadd.f32 -4.6875, %v677_v23  ;;  %v441_v9 = vadd.f32 -4.6875, %v679_v24 }
  0x25   :  { %504 = vtanh.f32 %v424_v31  ;;  %v442_v15 = vadd.f32 -4.6875, %v681_v25  ;;  %v443_v20 = vadd.f32 -4.6875, %v684_v26  ;;  %v444_v27 = vadd.f32 -5.46875, %v677_v23 }
  0x26   :  { %506 = vtanh.f32 %v425_v32  ;;  %v489_v37 = vpop.eup %488 }
  0x27   :  { %508 = vtanh.f32 %v426_v33  ;;  %v445_v33 = vadd.f32 -5.46875, %v679_v24 }
  0x28   :  { %v491_v39 = vpop.eup %490  ;;  %510 = vtanh.f32 %v427_v34  ;;  %v446_v34 = vadd.f32 -5.46875, %v681_v25 }
  0x29   :  { %v493_v41 = vpop.eup %492  ;;  %v85_v42 = vadd.f32 %v491_v39, %v489_v37  ;;  %512 = vtanh.f32 %v428_v35 }
  0x2a   :  { %v495_v44 = vpop.eup %494  ;;  %514 = vtanh.f32 %v429_v36 }
  0x2b   :  { %v497_v46 = vpop.eup %496  ;;  %v86_v47 = vadd.f32 %v493_v41, %v85_v42  ;;  %516 = vtanh.f32 %v430_v38  ;;  %v447_v38 = vadd.f32 -5.46875, %v684_v26 }
  0x2c   :  { %v499_v49 = vpop.eup %498  ;;  %518 = vtanh.f32 %v431_v40 }
  0x2d   :  { %v501_v51 = vpop.eup %500  ;;  %v87_v52 = vadd.f32 %v495_v44, %v86_v47  ;;  %v103_v53 = vadd.f32 %v499_v49, %v497_v46  ;;  %520 = vtanh.f32 %v432_v43  ;;  %v448_v46 = vadd.f32 -6.25, %v677_v23 }
  0x2e   :  { %v503_v55 = vpop.eup %502  ;;  %522 = vtanh.f32 %v433_v45  ;;  %v449_v49 = vadd.f32 -6.25, %v679_v24 }
  0x2f   :  { %v505_v57 = vpop.eup %504  ;;  %v88_v58 = vrot.slane %v87_v52, 4  ;;  %v104_v59 = vadd.f32 %v501_v51, %v103_v53  ;;  %524 = vtanh.f32 %v434_v48 }
  0x30   :  { %v507_v61 = vpop.eup %506  ;;  %526 = vtanh.f32 %v435_v50  ;;  %v450_v50 = vadd.f32 -6.25, %v681_v25 }
  0x31   :  { %v509_v63 = vpop.eup %508  ;;  %v105_v0 = vadd.f32 %v503_v55, %v104_v59  ;;  %v121_v1 = vadd.f32 %v507_v61, %v505_v57  ;;  %528 = vtanh.f32 %v436_v54  ;;  %v89_v5 = vadd.f32 %v88_v58, %v87_v52 }
  0x32   :  { %v511_v2 = vpop.eup %510  ;;  %530 = vtanh.f32 %v437_v56  ;;  %v451_v59 = vadd.f32 -6.25, %v684_v26 }
  0x33   :  { %v513_v4 = vpop.eup %512  ;;  %v106_v6 = vrot.slane %v105_v0, 4  ;;  %v122_v7 = vadd.f32 %v509_v63, %v121_v1  ;;  %532 = vtanh.f32 %v438_v60  ;;  %v90_v17 = vrot.slane %v89_v5, 2 }
  0x34   :  { %v515_v8 = vpop.eup %514  ;;  %534 = vtanh.f32 %v439_v62  ;;  %v452_v60 = vadd.f32 -7.03125, %v677_v23  ;;  %v453_v63 = vadd.f32 -7.03125, %v679_v24 }
  0x35   :  { %v517_v10 = vpop.eup %516  ;;  %v107_v11 = vadd.f32 %v106_v6, %v105_v0  ;;  %v123_v12 = vadd.f32 %v511_v2, %v122_v7  ;;  %v139_v13 = vadd.f32 %v515_v8, %v513_v4  ;;  %536 = vtanh.f32 %v440_v3 }
  0x36   :  { %v519_v14 = vpop.eup %518  ;;  %538 = vtanh.f32 %v441_v9  ;;  %v91_v36 = vadd.f32 %v90_v17, %v89_v5  ;;  %v454_v0 = vadd.f32 -7.03125, %v681_v25 }
  0x37   :  { %v521_v16 = vpop.eup %520  ;;  %v124_v18 = vrot.slane %v123_v12, 4  ;;  %v140_v19 = vadd.f32 %v517_v10, %v139_v13  ;;  %v108_v22 = vrot.slane %v107_v11, 2  ;;  %540 = vtanh.f32 %v442_v15 }
  0x38   :  { %v523_v21 = vpop.eup %522  ;;  %542 = vtanh.f32 %v443_v20  ;;  %v92_v51 = vrot.slane %v91_v36, 1  ;;  %v456_v15 = vadd.f32 -7.8125, %v677_v23 }
  0x39   :  { %v525_v28 = vpop.eup %524  ;;  %v125_v29 = vadd.f32 %v124_v18, %v123_v12  ;;  %v141_v30 = vadd.f32 %v519_v14, %v140_v19  ;;  %v157_v32 = vadd.f32 %v523_v21, %v521_v16  ;;  %v109_v40 = vadd.f32 %v108_v22, %v107_v11 }
  0x3a   :  { %v527_v31 = vpop.eup %526  ;;  %544 = vtanh.f32 %v444_v27  ;;  %v93_v1 = vadd.f32 %v92_v51, %v91_v36  ;;  %v455_v12 = vadd.f32 -7.03125, %v684_v26  ;;  %v457_v16 = vadd.f32 -7.8125, %v679_v24 }
  0x3b   :  { %v529_v35 = vpop.eup %528  ;;  %v142_v37 = vrot.slane %v141_v30, 4  ;;  %v126_v41 = vrot.slane %v125_v29, 2  ;;  %v158_v42 = vadd.f32 %v525_v28, %v157_v32  ;;  %546 = vtanh.f32 %v445_v33 }
  0x3c   :  { %v531_v39 = vpop.eup %530  ;;  %548 = vtanh.f32 %v446_v34  ;;  %v110_v55 = vrot.slane %v109_v40, 1  ;;  %v458_v27 = vadd.f32 -7.8125, %v681_v25  ;;  %v459_v34 = vadd.f32 -7.8125, %v684_v26 }
  0x3d   :  { %v533_v43 = vpop.eup %532  ;;  %v143_v44 = vadd.f32 %v142_v37, %v141_v30  ;;  %v175_v45 = vadd.f32 %v531_v39, %v529_v35  ;;  %v159_v48 = vadd.f32 %v527_v31, %v158_v42  ;;  %v127_v56 = vadd.f32 %v126_v41, %v125_v29 }
  0x3e   :  { %v535_v47 = vpop.eup %534  ;;  %550 = vtanh.f32 %v447_v38  ;;  %v111_v6 = vadd.f32 %v110_v55, %v109_v40  ;;  %v460_v41 = vadd.f32 -8.59375, %v677_v23  ;;  %v461_v42 = vadd.f32 -8.59375, %v679_v24 }
  0x3f   :  { %v144_v52 = vrot.slane %v143_v44, 2  ;;  %v176_v53 = vadd.f32 %v533_v43, %v175_v45  ;;  %v537_v54 = vpop.eup %536  ;;  %v160_v57 = vrot.slane %v159_v48, 4  ;;  %552 = vtanh.f32 %v448_v46 }
  0x40   :  { %v539_v61 = vpop.eup %538  ;;  %554 = vtanh.f32 %v449_v49  ;;  %v128_v7 = vrot.slane %v127_v56, 1  ;;  %v387_v22 = vsel %vm386_vm4, %v93_v1, %v111_v6  ;;  %v462_v49 = vadd.f32 -8.59375, %v681_v25 }
  0x41   :  { %v177_v58 = vadd.f32 %v535_v47, %v176_v53  ;;  %v161_v62 = vadd.f32 %v160_v57, %v159_v48  ;;  %v145_v2 = vadd.f32 %v144_v52, %v143_v44  ;;  %v193_v4 = vadd.f32 %v539_v61, %v537_v54  ;;  %v541_v5 = vpop.eup %540 }
  0x42   :  { %556 = vtanh.f32 %v450_v50  ;;  %v543_v9 = vpop.eup %542  ;;  %v129_v21 = vadd.f32 %v128_v7, %v127_v56  ;;  %v463_v50 = vadd.f32 -8.59375, %v684_v26  ;;  %v464_v57 = vadd.f32 -9.375, %v677_v23 }
  0x43   :  { %v178_v3 = vrot.slane %v177_v58, 4  ;;  %v162_v8 = vrot.slane %v161_v62, 2  ;;  %v194_v11 = vadd.f32 %v541_v5, %v193_v4  ;;  %558 = vtanh.f32 %v451_v59 }
  0x44   :  { %v545_v13 = vpop.eup %544  ;;  %560 = vtanh.f32 %v452_v60  ;;  %v146_v17 = vrot.slane %v145_v2, 1  ;;  %v389_v40 = vsel %vm388_vm5, %v387_v22, %v129_v21  ;;  %v467_v6 = vadd.f32 -9.375, %v684_v26 }
  0x45   :  { %v179_v10 = vadd.f32 %v178_v3, %v177_v58  ;;  %v163_v14 = vadd.f32 %v162_v8, %v161_v62  ;;  %v195_v19 = vadd.f32 %v543_v9, %v194_v11  ;;  %562 = vtanh.f32 %v453_v63  ;;  %v547_v20 = vpop.eup %546 }
  0x46   :  { %564 = vtanh.f32 %v454_v0  ;;  %v549_v28 = vpop.eup %548  ;;  %v211_v31 = vadd.f32 %v547_v20, %v545_v13  ;;  %v147_v36 = vadd.f32 %v146_v17, %v145_v2  ;;  %v465_v58 = vadd.f32 -9.375, %v679_v24 }
  0x47   :  { %v180_v18 = vrot.slane %v179_v10, 2  ;;  %v196_v30 = vrot.slane %v195_v19, 4  ;;  %566 = vtanh.f32 %v455_v12  ;;  %v164_v33 = vrot.slane %v163_v14, 1 }
  0x48   :  { %v551_v32 = vpop.eup %550  ;;  %568 = vtanh.f32 %v456_v15  ;;  %v212_v38 = vadd.f32 %v549_v28, %v211_v31  ;;  %v391_v54 = vsel %vm390_vm6, %v389_v40, %v147_v36  ;;  %v466_v2 = vadd.f32 -9.375, %v681_v25 }
  0x49   :  { %v181_v29 = vadd.f32 %v180_v18, %v179_v10  ;;  %v553_v35 = vpop.eup %552  ;;  %v197_v37 = vadd.f32 %v196_v30, %v195_v19  ;;  %570 = vtanh.f32 %v457_v16  ;;  %v165_v48 = vadd.f32 %v164_v33, %v163_v14 }
  0x4a   :  { %v555_v39 = vpop.eup %554  ;;  %572 = vtanh.f32 %v458_v27  ;;  %v213_v45 = vadd.f32 %v551_v32, %v212_v38  ;;  %v468_v10 = vadd.f32 -10.15625, %v677_v23  ;;  %v469_v14 = vadd.f32 -10.15625, %v679_v24 }
  0x4b   :  { %v182_v43 = vrot.slane %v181_v29, 1  ;;  %v198_v44 = vrot.slane %v197_v37, 2  ;;  %v229_v46 = vadd.f32 %v555_v39, %v553_v35  ;;  %574 = vtanh.f32 %v459_v34 }
  0x4c   :  { %v557_v47 = vpop.eup %556  ;;  %v214_v53 = vrot.slane %v213_v45, 4  ;;  %576 = vtanh.f32 %v460_v41  ;;  %v393_v0 = vsel %vm392_vm7, %v391_v54, %v165_v48  ;;  %v470_v18 = vadd.f32 -10.15625, %v681_v25 }
  0x4d   :  { %v559_v51 = vpop.eup %558  ;;  %v199_v52 = vadd.f32 %v198_v44, %v197_v37  ;;  %v230_v55 = vadd.f32 %v557_v47, %v229_v46  ;;  %v183_v60 = vadd.f32 %v182_v43, %v181_v29  ;;  %578 = vtanh.f32 %v461_v42 }
  0x4e   :  { %v561_v56 = vpop.eup %560  ;;  %v215_v62 = vadd.f32 %v214_v53, %v213_v45  ;;  %580 = vtanh.f32 %v462_v49  ;;  %v471_v21 = vadd.f32 -10.15625, %v684_v26  ;;  %v472_v31 = vadd.f32 -10.9375, %v677_v23 }
  0x4f   :  { %v563_v59 = vpop.eup %562  ;;  %v200_v61 = vrot.slane %v199_v52, 1  ;;  %v231_v5 = vadd.f32 %v559_v51, %v230_v55  ;;  %582 = vtanh.f32 %v463_v50  ;;  %v395_v13 = vsel %vm394_vm8, %v393_v0, %v183_v60 }
  0x50   :  { %v565_v63 = vpop.eup %564  ;;  %v247_v1 = vadd.f32 %v563_v59, %v561_v56  ;;  %v216_v4 = vrot.slane %v215_v62, 2  ;;  %584 = vtanh.f32 %v464_v57  ;;  %v473_v34 = vadd.f32 -10.9375, %v679_v24 }
  0x51   :  { %v567_v3 = vpop.eup %566  ;;  %v201_v8 = vadd.f32 %v200_v61, %v199_v52  ;;  %586 = vtanh.f32 %v465_v58  ;;  %v232_v20 = vrot.slane %v231_v5, 4  ;;  %v474_v38 = vadd.f32 -10.9375, %v681_v25 }
  0x52   :  { %v569_v7 = vpop.eup %568  ;;  %v248_v9 = vadd.f32 %v565_v63, %v247_v1  ;;  %v217_v12 = vadd.f32 %v216_v4, %v215_v62  ;;  %588 = vtanh.f32 %v466_v2  ;;  %v475_v44 = vadd.f32 -10.9375, %v684_v26 }
  0x53   :  { %v571_v11 = vpop.eup %570  ;;  %590 = vtanh.f32 %v467_v6  ;;  %v397_v27 = vsel %vm396_vm9, %v395_v13, %v201_v8  ;;  %v233_v37 = vadd.f32 %v232_v20, %v231_v5  ;;  %v476_v50 = vadd.f32 -11.71875, %v677_v23 }
  0x54   :  { %v573_v15 = vpop.eup %572  ;;  %v249_v16 = vadd.f32 %v567_v3, %v248_v9  ;;  %v265_v17 = vadd.f32 %v571_v11, %v569_v7  ;;  %v218_v19 = vrot.slane %v217_v12, 1  ;;  %592 = vtanh.f32 %v468_v10 }
  0x55   :  { %v575_v22 = vpop.eup %574  ;;  %594 = vtanh.f32 %v469_v14  ;;  %v234_v48 = vrot.slane %v233_v37, 2  ;;  %v477_v56 = vadd.f32 -11.71875, %v679_v24  ;;  %v478_v60 = vadd.f32 -11.71875, %v681_v25 }
  0x56   :  { %v250_v28 = vrot.slane %v249_v16, 4  ;;  %v266_v29 = vadd.f32 %v573_v15, %v265_v17  ;;  %v219_v30 = vadd.f32 %v218_v19, %v217_v12  ;;  %v577_v32 = vpop.eup %576  ;;  %596 = vtanh.f32 %v470_v18 }
  0x57   :  { %v579_v35 = vpop.eup %578  ;;  %598 = vtanh.f32 %v471_v21  ;;  %v235_v62 = vadd.f32 %v234_v48, %v233_v37  ;;  %v479_v0 = vadd.f32 -11.71875, %v684_v26  ;;  %v480_v7 = vadd.f32 -12.5, %v677_v23 }
  0x58   :  { %v267_v33 = vadd.f32 %v575_v22, %v266_v29  ;;  %v399_v36 = vsel %vm398_vm10, %v397_v27, %v219_v30  ;;  %v581_v39 = vpop.eup %580  ;;  %v251_v40 = vadd.f32 %v250_v28, %v249_v16  ;;  %v283_v42 = vadd.f32 %v579_v35, %v577_v32 }
  0x59   :  { %v583_v43 = vpop.eup %582  ;;  %600 = vtanh.f32 %v472_v31  ;;  %410 = vst [vmem:[%s780_s1] sm:$0xff] %v399_v36  ;;  %v481_v8 = vadd.f32 -12.5, %v679_v24  ;;  %v482_v12 = vadd.f32 -12.5, %v681_v25  ;;  %v236_v14 = vrot.slane %v235_v62, 1 }
  0x5a   :  { %v268_v41 = vrot.slane %v267_v33, 4  ;;  %v585_v45 = vpop.eup %584  ;;  %v284_v46 = vadd.f32 %v581_v39, %v283_v42  ;;  %602 = vtanh.f32 %v473_v34  ;;  %v252_v52 = vrot.slane %v251_v40, 2 }
  0x5b   :  { %v587_v47 = vpop.eup %586  ;;  %604 = vtanh.f32 %v474_v38  ;;  %v483_v16 = vadd.f32 -12.5, %v684_v26  ;;  %v237_v30 = vadd.f32 %v236_v14, %v235_v62 }
  0x5c   :  { %v269_v49 = vadd.f32 %v268_v41, %v267_v33  ;;  %v589_v51 = vpop.eup %588  ;;  %v285_v53 = vadd.f32 %v583_v43, %v284_v46  ;;  %v301_v54 = vadd.f32 %v587_v47, %v585_v45  ;;  %606 = vtanh.f32 %v475_v44 }
  0x5d   :  { %v591_v55 = vpop.eup %590  ;;  %608 = vtanh.f32 %v476_v50  ;;  %v253_v2 = vadd.f32 %v252_v52, %v251_v40 }
  0x5e   :  { %v593_v57 = vpop.eup %592  ;;  %v286_v58 = vrot.slane %v285_v53, 4  ;;  %v302_v59 = vadd.f32 %v589_v51, %v301_v54  ;;  %v270_v63 = vrot.slane %v269_v49, 2  ;;  %610 = vtanh.f32 %v477_v56 }
  0x5f   :  { %v595_v61 = vpop.eup %594  ;;  %612 = vtanh.f32 %v478_v60  ;;  %v254_v18 = vrot.slane %v253_v2, 1 }
  0x60   :  { %v597_v1 = vpop.eup %596  ;;  %v287_v3 = vadd.f32 %v286_v58, %v285_v53  ;;  %v303_v4 = vadd.f32 %v591_v55, %v302_v59  ;;  %v319_v5 = vadd.f32 %v595_v61, %v593_v57  ;;  %v271_v15 = vadd.f32 %v270_v63, %v269_v49 }
  0x61   :  { %v599_v6 = vpop.eup %598  ;;  %614 = vtanh.f32 %v479_v0  ;;  %v255_v31 = vadd.f32 %v254_v18, %v253_v2 }
  0x62   :  { %v288_v9 = vrot.slane %v287_v3, 2  ;;  %v304_v10 = vrot.slane %v303_v4, 4  ;;  %v320_v11 = vadd.f32 %v597_v1, %v319_v5  ;;  %616 = vtanh.f32 %v480_v7 }
  0x63   :  { %v601_v13 = vpop.eup %600  ;;  %618 = vtanh.f32 %v481_v8  ;;  %v272_v25 = vrot.slane %v271_v15, 1  ;;  %v400_v42 = vsel %vm386_vm4, %v237_v30, %v255_v31 }
  0x64   :  { %v603_v17 = vpop.eup %602  ;;  %v305_v19 = vadd.f32 %v304_v10, %v303_v4  ;;  %v321_v20 = vadd.f32 %v599_v6, %v320_v11  ;;  %v289_v24 = vadd.f32 %v288_v9, %v287_v3  ;;  %620 = vtanh.f32 %v482_v12 }
  0x65   :  { %v605_v21 = vpop.eup %604  ;;  %v337_v23 = vadd.f32 %v603_v17, %v601_v13  ;;  %622 = vtanh.f32 %v483_v16  ;;  %v273_v38 = vadd.f32 %v272_v25, %v271_v15  ;;  %v385_v17 = vld [vmem:[%s780_s1 + $0x10] sm:$0x1] }
  0x66   :  { %v306_v22 = vrot.slane %v305_v19, 2  ;;  %v322_v27 = vrot.slane %v321_v20, 4  ;;  %v607_v28 = vpop.eup %606  ;;  %v290_v35 = vrot.slane %v289_v24, 1 }
  0x67   :  { %v338_v29 = vadd.f32 %v605_v21, %v337_v23  ;;  %v609_v26 = vpop.eup %608  ;;  %v401_v51 = vsel %vm388_vm5, %v400_v42, %v273_v38 }
  0x68   :  { %v323_v32 = vadd.f32 %v322_v27, %v321_v20  ;;  %v307_v33 = vadd.f32 %v306_v22, %v305_v19  ;;  %v611_v37 = vpop.eup %610  ;;  %v291_v47 = vadd.f32 %v290_v35, %v289_v24 }
  0x69   :  { %v339_v34 = vadd.f32 %v607_v28, %v338_v29  ;;  %v355_v41 = vadd.f32 %v611_v37, %v609_v26  ;;  %v613_v43 = vpop.eup %612 }
  0x6a   :  { %v324_v36 = vrot.slane %v323_v32, 2  ;;  %v308_v44 = vrot.slane %v307_v33, 1  ;;  %v402_v61 = vsel %vm390_vm6, %v401_v51, %v291_v47 }
  0x6b   :  { %v340_v39 = vrot.slane %v339_v34, 4  ;;  %v615_v46 = vpop.eup %614  ;;  %v356_v48 = vadd.f32 %v613_v43, %v355_v41 }
  0x6c   :  { %v325_v40 = vadd.f32 %v324_v36, %v323_v32  ;;  %v617_v49 = vpop.eup %616  ;;  %v309_v56 = vadd.f32 %v308_v44, %v307_v33 }
  0x6d   :  { %v341_v45 = vadd.f32 %v340_v39, %v339_v34  ;;  %v619_v52 = vpop.eup %618  ;;  %v357_v54 = vadd.f32 %v615_v46, %v356_v48 }
  0x6e   :  { %v326_v53 = vrot.slane %v325_v40, 1  ;;  %v621_v55 = vpop.eup %620  ;;  %v373_v58 = vadd.f32 %v619_v52, %v617_v49  ;;  %v403_v2 = vsel %vm392_vm7, %v402_v61, %v309_v56 }
  0x6f   :  { %v342_v50 = vrot.slane %v341_v45, 2  ;;  %v623_v59 = vpop.eup %622  ;;  %v358_v60 = vrot.slane %v357_v54, 4 }
  0x70   :  { %v374_v63 = vadd.f32 %v621_v55, %v373_v58  ;;  %v327_v0 = vadd.f32 %v326_v53, %v325_v40 }
  0x71   :  { %v343_v57 = vadd.f32 %v342_v50, %v341_v45  ;;  %v359_v1 = vadd.f32 %v358_v60, %v357_v54 }
  0x72   :  { %v375_v3 = vadd.f32 %v623_v59, %v374_v63  ;;  %v404_v8 = vsel %vm394_vm8, %v403_v2, %v327_v0 }
  0x73   :  { %v344_v62 = vrot.slane %v343_v57, 1  ;;  %v360_v4 = vrot.slane %v359_v1, 2 }
  0x74   :  { %v376_v6 = vrot.slane %v375_v3, 4 }
  0x75   :  { %v345_v5 = vadd.f32 %v344_v62, %v343_v57  ;;  %v361_v7 = vadd.f32 %v360_v4, %v359_v1 }
  0x76   :  { %v377_v9 = vadd.f32 %v376_v6, %v375_v3 }
  0x77   :  { %v362_v10 = vrot.slane %v361_v7, 1  ;;  %v405_v11 = vsel %vm396_vm9, %v404_v8, %v345_v5 }
  0x78   :  { %v378_v12 = vrot.slane %v377_v9, 2 }
  0x79   :  { %v363_v13 = vadd.f32 %v362_v10, %v361_v7 }
  0x7a   :  { %v379_v14 = vadd.f32 %v378_v12, %v377_v9 }
  0x7b   :  { %v406_v15 = vsel %vm398_vm10, %v405_v11, %v363_v13 }
  0x7c   :  { %v380_v16 = vrot.slane %v379_v14, 1  ;;  %411 = vst [vmem:[%s780_s1 + $0x8] sm:$0xff] %v406_v15 }
  0x7e   :  { %v381_v18 = vadd.f32 %v380_v16, %v379_v14 }
  0x80   :  { %v409_v19 = vadd.f32 %v385_v17, %v381_v18 }
  0x82   :  { %412 = vst [vmem:[%s780_s1 + $0x10] sm:$0x1] %v409_v19 }
  0x83   :  { %417 = vsyncpa [#allocation3], 1 }

</bundles_post_ra>
